<compile_context>
chip_gen: v7x
topology: tpu7x:2x2x1
jax: 0.10.0
libtpu: 0.0.40
codegen_flags: <defaults>
</compile_context>

<pallas_src>
import functools

import jax
import jax.numpy as jnp
from jax.experimental import pallas as pl
from jax.experimental.pallas import tpu as pltpu


def _delta_loss_kernel(prev_ref, w_ref, out_ref, acc_ref, *,
                       tm, tiles_per_core, total_rows, needs_mask):
    c = pl.program_id(0)          # core-split ("parallel") axis
    i = pl.program_id(1)          # row-tile ("arbitrary" / reduction) axis

    @pl.when(i == 0)
    def _():
        acc_ref[...] = jnp.zeros_like(acc_ref)

    # Hot path: elementwise only (VPU); co-issues for free under the DMA loop.
    d = w_ref[...].astype(jnp.float32) - prev_ref[...].astype(jnp.float32)
    sq = d * d

    if needs_mask:
        # Zero rows past the real row count (partial last tile and the
        # clamped/duplicated tiles created by the 2-way core split).
        g = c * tiles_per_core + i
        row = g * tm + jax.lax.broadcasted_iota(jnp.int32, (tm, 1), 0)
        sq = jnp.where(row < total_rows, sq, jnp.float32(0.0))

    acc_ref[...] += sq            # vector accumulate; no XLU / scalar RMW here

    @pl.when(i == tiles_per_core - 1)
    def _():
        partial = jnp.sum(acc_ref[...])     # one cross-lane reduce per core
        out_ref[...] = jnp.full(out_ref.shape, partial, dtype=out_ref.dtype)


def _pick_tm(m, n, itemsize):
    """Largest row tile (multiple of the packed-sublane count) with roughly
    1M elements per input tile -> ~4 MiB f32-equivalent (measured to sit at
    ~85%+ of the HBM roofline), comfortably inside every generation's VMEM."""
    sublane = max(8, 32 // max(1, itemsize))     # f32: 8, bf16: 16, int8: 32
    target_elems = 1 << 20
    rows = max(sublane, (target_elems // max(1, n)) // sublane * sublane)
    cap = ((m + sublane - 1) // sublane) * sublane   # no point exceeding M
    return min(rows, cap)


def delta_loss(prev_weight, W, lambda_delta, *, tm=None):
    """JAX/Pallas equivalent of DeltaLoss.forward.

    NOTE: returned in float32 (the accumulation dtype); cast to W.dtype
    outside if exact dtype parity with the torch module is required.
    """
    if prev_weight is None:
        return jnp.asarray(0.0, dtype=jnp.float32)

    # Flatten to 2-D (M, N) with a lane-dense last dim (glue, plain JAX).
    if W.ndim == 0:
        W2 = W.reshape(1, 1)
        P2 = prev_weight.reshape(1, 1)
    else:
        W2 = W.reshape(-1, W.shape[-1])
        P2 = prev_weight.reshape(-1, prev_weight.shape[-1])
    M, N = W2.shape

    if tm is None:
        tm = _pick_tm(M, N, W2.dtype.itemsize)
    tm = max(8, (tm // 8) * 8)                   # keep the (8, 128) contract
    # TODO(synk): also tile N for extremely wide (>~256K-col) weights so the
    # minimum tile still fits the v7x VMEM budget.

    num_tiles = pl.cdiv(M, tm)
    n_split = 2 if num_tiles >= 2 else 1         # 2 TCs on v7x; serial elsewhere
    tiles_per_core = pl.cdiv(num_tiles, n_split)
    needs_mask = (n_split * tiles_per_core * tm) != M

    def in_map(c, i):
        # Clamp so the DMA never addresses a block past the array; clamped
        # duplicates are zeroed by the row mask inside the kernel.
        g = jnp.minimum(c * tiles_per_core + i, num_tiles - 1)
        return (g, 0)

    kernel = functools.partial(
        _delta_loss_kernel,
        tm=tm, tiles_per_core=tiles_per_core, total_rows=M,
        needs_mask=needs_mask)

    # VMEM budget: 2 inputs x 2 pipeline buffers + f32 accumulator tile +
    # elementwise temporaries, with headroom; capped at 48 MiB (safe on v7x).
    tile_in_bytes = tm * N * W2.dtype.itemsize
    tile_f32_bytes = tm * N * 4
    vmem_limit = int(min(48 << 20,
                         max(16 << 20,
                             4 * tile_in_bytes + 4 * tile_f32_bytes + (2 << 20))))

    out = pl.pallas_call(
        kernel,
        out_shape=jax.ShapeDtypeStruct((n_split, 8, 128), jnp.float32),
        grid_spec=pltpu.PrefetchScalarGridSpec(
            num_scalar_prefetch=0,
            grid=(n_split, tiles_per_core),
            in_specs=[
                pl.BlockSpec((tm, N), in_map),
                pl.BlockSpec((tm, N), in_map),
            ],
            out_specs=pl.BlockSpec((1, 8, 128), lambda c, i: (c, 0, 0)),
            scratch_shapes=[pltpu.VMEM((tm, N), jnp.float32)],
        ),
        compiler_params=pltpu.CompilerParams(
            dimension_semantics=("parallel", "arbitrary"),
            vmem_limit_bytes=vmem_limit,
        ),
    )(P2, W2)

    # Sum the per-core partials and apply the scale (tiny, plain JAX).
    return jnp.float32(lambda_delta) * jnp.sum(out[:, 0, 0])


if __name__ == "__main__":
    key = jax.random.PRNGKey(0)
    k1, k2, k3, k4 = jax.random.split(key, 4)
    lambda_delta = 0.5

    # Test 1: small dense f32 weight (e.g. a 32x256 linear layer).
    M, N = 32, 256
    prev_w = jax.random.normal(k1, (M, N), dtype=jnp.float32)
    W = jax.random.normal(k2, (M, N), dtype=jnp.float32)
    loss = delta_loss(prev_w, W, lambda_delta)
    jax.block_until_ready(loss)
    ref = lambda_delta * jnp.sum((W - prev_w) ** 2)
    assert jnp.allclose(loss, ref, rtol=1e-4, atol=1e-5), (loss, ref)

    # Test 2: non-divisible rows + non-128-multiple cols; exercises the masked
    # tail tiles and the 2-way (megacore) row split (tm override keeps it small).
    M2, N2 = 1000, 272
    prev_w2 = jax.random.normal(k3, (M2, N2), dtype=jnp.float32)
    W2 = jax.random.normal(k4, (M2, N2), dtype=jnp.float32)
    loss2 = delta_loss(prev_w2, W2, lambda_delta, tm=128)
    jax.block_until_ready(loss2)
    ref2 = lambda_delta * jnp.sum((W2 - prev_w2) ** 2)
    assert jnp.allclose(loss2, ref2, rtol=1e-4, atol=1e-4), (loss2, ref2)

    # Test 3: bf16 weights (half the HBM traffic; cast to f32 inside the kernel).
    W3 = W.astype(jnp.bfloat16)
    prev_w3 = prev_w.astype(jnp.bfloat16)
    loss3 = delta_loss(prev_w3, W3, lambda_delta)
    jax.block_until_ready(loss3)
    ref3 = lambda_delta * jnp.sum(
        (W3.astype(jnp.float32) - prev_w3.astype(jnp.float32)) ** 2)
    assert jnp.allclose(loss3, ref3, rtol=1e-4, atol=1e-4), (loss3, ref3)

    # None-branch check (matches the PyTorch early return).
    zero = delta_loss(None, W, lambda_delta)
    jax.block_until_ready(zero)
    assert zero == 0.0

    print("KERNEL_OK")
</pallas_src>

<mosaic_0001>
module attributes {stable_mosaic.version = 11 : i64} {
  func.func @_delta_loss_kernel(%arg0: i32, %arg1: i32, %arg2: memref<32x256xf32, #tpu.memory_space<vmem>>, %arg3: memref<32x256xf32, #tpu.memory_space<vmem>>, %arg4: memref<1x8x128xf32, #tpu.memory_space<vmem>>, %arg5: memref<32x256xf32, #tpu.memory_space<vmem>>) attributes {dimension_semantics = [#tpu.dimension_semantics<parallel>, #tpu.dimension_semantics<arbitrary>], iteration_bounds = array<i64: 1, 1>, scalar_prefetch = 0 : i64, scratch_operands = 1 : i64, tpu.core_type = #tpu.core_type<tc>, window_params = [{transform_indices = @transform_0, window_bounds = array<i64: 32, 256>}, {transform_indices = @transform_1, window_bounds = array<i64: 32, 256>}, {transform_indices = @transform_2, window_bounds = array<i64: 1, 8, 128>}]} {
    %c0_i32 = arith.constant 0 : i32
    %0 = arith.cmpi eq, %arg1, %c0_i32 : i32
    %1 = arith.extui %0 : i1 to i32
    %c0_i32_0 = arith.constant 0 : i32
    %2 = arith.cmpi ne, %1, %c0_i32_0 : i32
    scf.if %2 {
      %cst = arith.constant 0.000000e+00 : f32
      %13 = vector.broadcast %cst : f32 to vector<32x256xf32>
      %c0_10 = arith.constant 0 : index
      %c0_11 = arith.constant 0 : index
      %14 = vector.load %arg5[%c0_10, %c0_11] : memref<32x256xf32, #tpu.memory_space<vmem>>, vector<32x256xf32>
      tpu.vector_store %arg5[%c0_10, %c0_11], %13 {strides = array<i32>} : memref<32x256xf32, #tpu.memory_space<vmem>>, vector<32x256xf32>,
    } else {
    }
    %c0 = arith.constant 0 : index
    %c0_1 = arith.constant 0 : index
    %3 = vector.load %arg3[%c0, %c0_1] : memref<32x256xf32, #tpu.memory_space<vmem>>, vector<32x256xf32>
    %c0_2 = arith.constant 0 : index
    %c0_3 = arith.constant 0 : index
    %4 = vector.load %arg2[%c0_2, %c0_3] : memref<32x256xf32, #tpu.memory_space<vmem>>, vector<32x256xf32>
    %5 = arith.subf %3, %4 : vector<32x256xf32>
    %6 = arith.mulf %5, %5 : vector<32x256xf32>
    %c0_4 = arith.constant 0 : index
    %c0_5 = arith.constant 0 : index
    %7 = vector.load %arg5[%c0_4, %c0_5] : memref<32x256xf32, #tpu.memory_space<vmem>>, vector<32x256xf32>
    %8 = arith.addf %7, %6 : vector<32x256xf32>
    %c0_6 = arith.constant 0 : index
    %c0_7 = arith.constant 0 : index
    %9 = vector.load %arg5[%c0_6, %c0_7] : memref<32x256xf32, #tpu.memory_space<vmem>>, vector<32x256xf32>
    tpu.vector_store %arg5[%c0_6, %c0_7], %8 {strides = array<i32>} : memref<32x256xf32, #tpu.memory_space<vmem>>, vector<32x256xf32>,
    %c0_i32_8 = arith.constant 0 : i32
    %10 = arith.cmpi eq, %arg1, %c0_i32_8 : i32
    %11 = arith.extui %10 : i1 to i32
    %c0_i32_9 = arith.constant 0 : i32
    %12 = arith.cmpi ne, %11, %c0_i32_9 : i32
    scf.if %12 {
      %c0_10 = arith.constant 0 : index
      %c0_11 = arith.constant 0 : index
      %13 = vector.load %arg5[%c0_10, %c0_11] : memref<32x256xf32, #tpu.memory_space<vmem>>, vector<32x256xf32>
      %14 = vector.shape_cast %13 : vector<32x256xf32> to vector<1x32x256xf32>
      %cst = arith.constant dense<0.000000e+00> : vector<1xf32>
      %15 = vector.multi_reduction <add>, %14, %cst [1, 2] : vector<1x32x256xf32> to vector<1xf32>
      %16 = vector.shape_cast %15 : vector<1xf32> to vector<1x1x1xf32>
      %17 = vector.extract %16[0, 0, 0] : f32 from vector<1x1x1xf32>
      %18 = vector.broadcast %17 : f32 to vector<1x8x128xf32>
      %c0_12 = arith.constant 0 : index
      %c0_13 = arith.constant 0 : index
      %c0_14 = arith.constant 0 : index
      %19 = vector.load %arg4[%c0_12, %c0_13, %c0_14] : memref<1x8x128xf32, #tpu.memory_space<vmem>>, vector<1x8x128xf32>
      tpu.vector_store %arg4[%c0_12, %c0_13, %c0_14], %18 {strides = array<i32>} : memref<1x8x128xf32, #tpu.memory_space<vmem>>, vector<1x8x128xf32>,
    } else {
    }
    return
  }
  func.func @transform_0(%arg0: i32, %arg1: i32) -> (i32, i32) {
    %c1_i32 = arith.constant 1 : i32
    %0 = arith.muli %arg0, %c1_i32 : i32
    %1 = arith.addi %0, %arg1 : i32
    %c0_i32 = arith.constant 0 : i32
    %2 = arith.minsi %1, %c0_i32 : i32
    %c0_i32_0 = arith.constant 0 : i32
    %c0_i32_1 = arith.constant 0 : i32
    return %2, %c0_i32_0 : i32, i32
  }
  func.func @transform_1(%arg0: i32, %arg1: i32) -> (i32, i32) {
    %c1_i32 = arith.constant 1 : i32
    %0 = arith.muli %arg0, %c1_i32 : i32
    %1 = arith.addi %0, %arg1 : i32
    %c0_i32 = arith.constant 0 : i32
    %2 = arith.minsi %1, %c0_i32 : i32
    %c0_i32_0 = arith.constant 0 : i32
    %c0_i32_1 = arith.constant 0 : i32
    return %2, %c0_i32_0 : i32, i32
  }
  func.func @transform_2(%arg0: i32, %arg1: i32) -> (i32, i32, i32) {
    %c0_i32 = arith.constant 0 : i32
    %c0_i32_0 = arith.constant 0 : i32
    %c0_i32_1 = arith.constant 0 : i32
    return %arg0, %c0_i32, %c0_i32_0 : i32, i32, i32
  }
}

</mosaic_0001>

<bundles_post_ra>
// kernel: tpu_custom_call.1
= control target key start
LH: loop header
LB: loop body
LE: loop exit
PB: predicated region body
PF: predicated region fallthrough
CT: control target
= control target key end

     0   :  { %7 = vsyncpa [#allocation4], 0  ;;  %s314_s0 = inlined_call_operand.hbm [shape: f32[32,256], index: 0, kind: input, shape index: {}]   ;;  %s315_s1 = inlined_call_operand.hbm [shape: f32[32,256], index: 1, kind: input, shape index: {}]   ;;  %s316_s2 = inlined_call_operand.hbm [shape: f32[1,8,128], index: 2, kind: output, shape index: {}]  }
   0x1   :  { %8 = vsyncpa [#allocation7], 0 }
   0x2   :  { %9 = vsyncpa [#allocation5], 0  ;;  %s258_s9 = smov [#allocation3]   ;;  %s186_s13 = scalar_lea.hbm %s314_s0, 1024 }
   0x3   :  { %s22_s10 = sshll.u32 %s258_s9, 4  ;;  %p187_p0 = scmp.ne.s32.totalorder %s314_s0, %s186_s13  ;;  %s23_s10 = int_to_ptr.vmem [resolvable:$true] %s22_s10 }
   0x4   :  { %p190_p1 = scmp.lt.u32.totalorder %s186_s13, %s314_s0 }
   0x6   :  { %p192_p2 = pnand %p190_p1, %p187_p0 }
   0x8   :  { %195 = shalt.err (!%p192_p2)
}
   0x9   :  { %s196_s18 = scalar_lea.vmem %s23_s10, 1024  ;;  %p201_p4 = scmp.lt.s32.totalorder %s23_s10, %s23_s10 }
   0xa   :  { %p197_p3 = scmp.ne.s32.totalorder %s23_s10, %s196_s18  ;;  %p202_p5 = scmp.lt.s32.totalorder %s196_s18, %s196_s18 }
   0xc   :  { %p203_p6 = por %p202_p5, %p201_p4 }
   0xe   :  { %p204_p7 = pnand %p203_p6, %p197_p3 }
  0x10   :  { %207 = shalt.err (!%p204_p7)
}
  0x11   :  { %s259_s19 = smov 256   ;;  %s260_s20 = smov 16  }
  0x12   :  { %28 = dma.hbm_to_vmem [thread:$0]  %s314_s0, 1024, %s23_s10, [#allocation4], %s259_s19, %s259_s19, %s260_s20  }
  0x13   :  { %s261_s23 = smov [#allocation6]   ;;  %s208_s27 = scalar_lea.hbm %s315_s1, 1024 }
  0x14   :  { %s41_s24 = sshll.u32 %s261_s23, 4  ;;  %p209_p8 = scmp.ne.s32.totalorder %s315_s1, %s208_s27  ;;  %s42_s24 = int_to_ptr.vmem [resolvable:$true] %s41_s24 }
  0x15   :  { %p212_p9 = scmp.lt.u32.totalorder %s208_s27, %s315_s1 }
  0x17   :  { %p214_p10 = pnand %p212_p9, %p209_p8 }
  0x19   :  { %217 = shalt.err (!%p214_p10)
}
  0x1a   :  { %s218_s4 = scalar_lea.vmem %s42_s24, 1024  ;;  %p223_p12 = scmp.lt.s32.totalorder %s42_s24, %s42_s24 }
  0x1b   :  { %p219_p11 = scmp.ne.s32.totalorder %s42_s24, %s218_s4  ;;  %p224_p13 = scmp.lt.s32.totalorder %s218_s4, %s218_s4 }
  0x1d   :  { %p225_p0 = por %p224_p13, %p223_p12 }
  0x1f   :  { %p226_p1 = pnand %p225_p0, %p219_p11 }
  0x21   :  { %229 = shalt.err (!%p226_p1)
}
  0x22   :  { %47 = dma.hbm_to_vmem [thread:$0]  %s315_s1, 1024, %s42_s24, [#allocation7], %s259_s19, %s259_s19, %s260_s20  }
  0x23   :  { %252 = dma.done.wait [#allocation4], 1024  }
  0x24   :  { %253 = vsyncadd [#allocation4], 4294966272 }
  0x25   :  { %254 = dma.done.wait [#allocation7], 1024  }
  0x26   :  { %255 = vsyncadd [#allocation7], 4294966272  ;;  %v74_v0 = vld [vmem:[#allocation6] sm:$0xff]  ;;  %v75_v1 = vld [vmem:[#allocation6 + $0x8] sm:$0xff]  ;;  %s262_s1 = smov [#allocation8]  }
  0x27   :  { %v76_v2 = vld [vmem:[#allocation6 + $0x10] sm:$0xff]  ;;  %v77_v3 = vld [vmem:[#allocation6 + $0x18] sm:$0xff]  ;;  %v78_v4 = vld [vmem:[#allocation6 + $0x20] sm:$0xff]  ;;  %s165_s6 = sshll.u32 %s262_s1, 4  ;;  %s166_s6 = int_to_ptr.vmem [resolvable:$true] %s165_s6 }
  0x28   :  { %v82_v5 = vld [vmem:[#allocation3] sm:$0xff]  ;;  %v83_v6 = vld [vmem:[#allocation3 + $0x8] sm:$0xff]  ;;  %v84_v7 = vld [vmem:[#allocation3 + $0x10] sm:$0xff]  ;;  %s230_s8 = scalar_lea.vmem %s166_s6, 128  ;;  %p235_p3 = scmp.lt.s32.totalorder %s166_s6, %s166_s6 }
  0x29   :  { %v85_v8 = vld [vmem:[#allocation3 + $0x18] sm:$0xff]  ;;  %v90_v9 = vsub.f32 %v74_v0, %v82_v5  ;;  %v86_v10 = vld [vmem:[#allocation3 + $0x20] sm:$0xff]  ;;  %v91_v11 = vsub.f32 %v75_v1, %v83_v6  ;;  %v92_v12 = vsub.f32 %v76_v2, %v84_v7  ;;  %v79_v14 = vld [vmem:[#allocation6 + $0x28] sm:$0xff]  ;;  %p231_p2 = scmp.ne.s32.totalorder %s166_s6, %s230_s8  ;;  %p236_p4 = scmp.lt.s32.totalorder %s230_s8, %s230_s8 }
  0x2a   :  { %v93_v13 = vsub.f32 %v77_v3, %v85_v8  ;;  %v87_v15 = vld [vmem:[#allocation3 + $0x28] sm:$0xff]  ;;  %v94_v17 = vsub.f32 %v78_v4, %v86_v10  ;;  %v80_v20 = vld [vmem:[#allocation6 + $0x30] sm:$0xff]  ;;  %v81_v25 = vld [vmem:[#allocation6 + $0x38] sm:$0xff] }
  0x2b   :  { %v98_v16 = vmul.f32 %v90_v9, %v90_v9  ;;  %v99_v18 = vmul.f32 %v91_v11, %v91_v11  ;;  %v100_v19 = vmul.f32 %v92_v12, %v92_v12  ;;  %v88_v21 = vld [vmem:[#allocation3 + $0x30] sm:$0xff]  ;;  %v95_v22 = vsub.f32 %v79_v14, %v87_v15  ;;  %v89_v26 = vld [vmem:[#allocation3 + $0x38] sm:$0xff]  ;;  %p237_p5 = por %p236_p4, %p235_p3 }
  0x2c   :  { %v101_v23 = vmul.f32 %v93_v13, %v93_v13  ;;  %v96_v27 = vsub.f32 %v80_v20, %v88_v21  ;;  %v102_v28 = vmul.f32 %v94_v17, %v94_v17  ;;  %v97_v30 = vsub.f32 %v81_v25, %v89_v26 }
  0x2d   :  { %v141_v24 = vadd.f32 %v99_v18, %v98_v16  ;;  %v103_v31 = vmul.f32 %v95_v22, %v95_v22  ;;  %p238_p6 = pnand %p237_p5, %p231_p2 }
  0x2e   :  { %v104_v33 = vmul.f32 %v96_v27, %v96_v27  ;;  %v105_v35 = vmul.f32 %v97_v30, %v97_v30 }
  0x2f   :  { %v142_v29 = vadd.f32 %v141_v24, %v100_v19 }
  0x31   :  { %v143_v32 = vadd.f32 %v142_v29, %v101_v23 }
  0x33   :  { %v144_v34 = vadd.f32 %v143_v32, %v102_v28 }
  0x35   :  { %v145_v36 = vadd.f32 %v144_v34, %v103_v31 }
  0x37   :  { %v146_v37 = vadd.f32 %v145_v36, %v104_v33 }
  0x39   :  { %v147_v38 = vadd.f32 %v146_v37, %v105_v35 }
  0x3b   :  { %148 = vadd.xlane.f32.xlu0 %v147_v38 }
  0xc8   :  { %v149_v39 = vpop.xlane.xlu0 %148 }
  0xc9   :  { %v150_v40 = vrot.slane %v149_v39, 4 }
  0xcb   :  { %v151_v41 = vadd.f32 %v150_v40, %v149_v39 }
  0xcd   :  { %v152_v42 = vrot.slane %v151_v41, 2 }
  0xcf   :  { %v153_v43 = vadd.f32 %v152_v42, %v151_v41 }
  0xd1   :  { %v154_v44 = vrot.slane %v153_v43, 1 }
  0xd3   :  { %v155_v45 = vadd.f32 %v154_v44, %v153_v43 }
  0xd5   :  { %179 = vpush %v155_v45 }
 0x106   :  { %s180_s7 = spop %179 }
 0x107   :  { %v157_v46 = vstv %s180_s7 }
 0x108   :  { %158 = vst [vmem:[#allocation8] sm:$0xff] %v157_v46 }
 0x109   :  { %241 = shalt.err (!%p238_p6)
}
 0x10a   :  { %s242_s11 = scalar_lea.hbm %s316_s2, 128 }
 0x10b   :  { %p243_p7 = scmp.ne.s32.totalorder %s316_s2, %s242_s11  ;;  %p246_p8 = scmp.lt.u32.totalorder %s242_s11, %s316_s2 }
 0x10d   :  { %p248_p9 = pnand %p246_p8, %p243_p7 }
 0x10f   :  { %251 = shalt.err (!%p248_p9)
}
 0x110   :  { %168 = dma.vmem_to_hbm [thread:$0]  %s166_s6, 128, %s316_s2, [#allocation5]  }
 0x111   :  { %256 = dma.done.wait [#allocation5], 128  }
 0x112   :  { %257 = vsyncadd [#allocation5], 4294967168 }
 0x113   :  { %172 = vsyncpa [#allocation4], 1 }
 0x114   :  { %173 = vsyncpa [#allocation7], 1 }
 0x115   :  { %174 = vsyncpa [#allocation5], 1 }

</bundles_post_ra>
